<compile_context>
chip_gen: v7x
topology: tpu7x:2x2x1
jax: 0.10.0
libtpu: 0.0.40
codegen_flags: <defaults>
</compile_context>

<pallas_src>
import jax
import jax.numpy as jnp
from jax.experimental import pallas as pl
from jax.experimental.pallas import tpu as pltpu


def _round_up(n, m):
    return ((n + m - 1) // m) * m


def mlp_kernel(x_ref, w1_ref, b1_ref, w2_ref, b2_ref, o_ref):
    # Layer 1 on the MXU: bf16 x bf16 -> f32 accumulate, f32 bias add.
    xb = x_ref[...].astype(jnp.bfloat16)
    a = jnp.dot(xb, w1_ref[...], preferred_element_type=jnp.float32)
    a = a + b1_ref[...]
    # Sigmoid in f32; approx reciprocal runs on the otherwise-idle EUP slot.
    h = pl.reciprocal(1.0 + jnp.exp(-a), approx=True)
    # Layer 2 on the MXU.
    out = jnp.dot(h.astype(jnp.bfloat16), w2_ref[...],
                  preferred_element_type=jnp.float32)
    out = out + b2_ref[...]
    o_ref[...] = out.astype(o_ref.dtype)


def mnist_mlp_forward(x, w1, b1, w2, b2, *, batch_tile=128):
    """x: (B, ndim) f32; w1: (ndim, 785); b1: (1, 785); w2: (785, 10); b2: (1, 10).

    Weights are stored transposed vs. PyTorch, i.e. (in, out).
    """
    B, ndim = x.shape
    hidden = w1.shape[1]
    out_dim = w2.shape[1]

    # Lane-dense padding: hidden 785 -> 896, classes 10 -> 128.
    h_pad = _round_up(hidden, 128)
    o_pad = _round_up(out_dim, 128)

    # Batch tile: up to `batch_tile` rows, multiple of 8 sublanes.
    tb = min(batch_tile, _round_up(B, 8))
    b_pad = _round_up(B, tb)

    x_p = jnp.pad(x, ((0, b_pad - B), (0, 0))).astype(jnp.float32)
    # Zero-padded hidden columns/rows: padded units give sigmoid(0)=0.5 but are
    # multiplied by zero w2 rows, so the output is unchanged.
    w1_p = jnp.pad(w1, ((0, 0), (0, h_pad - hidden))).astype(jnp.bfloat16)
    b1_p = jnp.pad(b1, ((0, 0), (0, h_pad - hidden))).astype(jnp.float32)
    w2_p = jnp.pad(w2, ((0, h_pad - hidden), (0, o_pad - out_dim))).astype(jnp.bfloat16)
    b2_p = jnp.pad(b2, ((0, 0), (0, o_pad - out_dim))).astype(jnp.float32)

    grid = (b_pad // tb,)

    out = pl.pallas_call(
        mlp_kernel,
        out_shape=jax.ShapeDtypeStruct((b_pad, o_pad), jnp.float32),
        grid=grid,
        in_specs=[
            pl.BlockSpec((tb, ndim), lambda i: (i, 0)),
            # Constant index_map -> weights/biases stay VMEM resident across
            # all batch tiles (single DMA per call).
            pl.BlockSpec((ndim, h_pad), lambda i: (0, 0)),
            pl.BlockSpec((1, h_pad), lambda i: (0, 0)),
            pl.BlockSpec((h_pad, o_pad), lambda i: (0, 0)),
            pl.BlockSpec((1, o_pad), lambda i: (0, 0)),
        ],
        out_specs=pl.BlockSpec((tb, o_pad), lambda i: (i, 0)),
        compiler_params=pltpu.CompilerParams(
            dimension_semantics=("parallel",)),
    )(x_p, w1_p, b1_p, w2_p, b2_p)

    return out[:B, :out_dim]


def init_params(key, ndim, hidden=785, class_num=10):
    """Deterministic init mimicking torch.nn.Linear default (U[-1/sqrt(in), 1/sqrt(in)])."""
    k1, k2, k3, k4 = jax.random.split(key, 4)
    lim1 = 1.0 / jnp.sqrt(jnp.float32(ndim))
    lim2 = 1.0 / jnp.sqrt(jnp.float32(hidden))
    # Stored as (in, out) — transposed relative to PyTorch's (out, in).
    w1 = jax.random.uniform(k1, (ndim, hidden), jnp.float32, -lim1, lim1)
    b1 = jax.random.uniform(k2, (1, hidden), jnp.float32, -lim1, lim1)
    w2 = jax.random.uniform(k3, (hidden, class_num), jnp.float32, -lim2, lim2)
    b2 = jax.random.uniform(k4, (1, class_num), jnp.float32, -lim2, lim2)
    return w1, b1, w2, b2


def reference_forward(x, w1, b1, w2, b2):
    # Mirrors the kernel's precision policy: bf16 MXU operands, f32 accumulation,
    # f32 elementwise (bias adds, sigmoid).
    a = jnp.dot(x.astype(jnp.bfloat16), w1.astype(jnp.bfloat16),
                preferred_element_type=jnp.float32) + b1
    h = jax.nn.sigmoid(a)
    return jnp.dot(h.astype(jnp.bfloat16), w2.astype(jnp.bfloat16),
                   preferred_element_type=jnp.float32) + b2


if __name__ == "__main__":
    key = jax.random.PRNGKey(0)
    kx, kp = jax.random.split(key)

    batch, ndim = 8, 32
    x = jax.random.normal(kx, (batch, ndim), jnp.float32)
    w1, b1, w2, b2 = init_params(kp, ndim)

    out = mnist_mlp_forward(x, w1, b1, w2, b2)
    out = jax.block_until_ready(out)

    ref = reference_forward(x, w1, b1, w2, b2)
    assert out.shape == (batch, 10)
    assert jnp.allclose(out, ref, atol=2e-2, rtol=2e-2), float(
        jnp.max(jnp.abs(out - ref)))

    print("KERNEL_OK")
</pallas_src>

<mosaic_0001>
module attributes {stable_mosaic.version = 11 : i64} {
  func.func @mlp_kernel(%arg0: i32, %arg1: memref<8x32xf32, #tpu.memory_space<vmem>>, %arg2: memref<32x896xbf16, #tpu.memory_space<vmem>>, %arg3: memref<1x896xf32, #tpu.memory_space<vmem>>, %arg4: memref<896x128xbf16, #tpu.memory_space<vmem>>, %arg5: memref<1x128xf32, #tpu.memory_space<vmem>>, %arg6: memref<8x128xf32, #tpu.memory_space<vmem>>) attributes {dimension_semantics = [#tpu.dimension_semantics<parallel>], iteration_bounds = array<i64: 1>, scalar_prefetch = 0 : i64, scratch_operands = 0 : i64, tpu.core_type = #tpu.core_type<tc>, window_params = [{transform_indices = @transform_0, window_bounds = array<i64: 8, 32>}, {pipeline_mode = #tpu.pipeline_mode<synchronous>, transform_indices = @transform_1, window_bounds = array<i64: 32, 896>}, {pipeline_mode = #tpu.pipeline_mode<synchronous>, transform_indices = @transform_2, window_bounds = array<i64: 1, 896>}, {pipeline_mode = #tpu.pipeline_mode<synchronous>, transform_indices = @transform_3, window_bounds = array<i64: 896, 128>}, {pipeline_mode = #tpu.pipeline_mode<synchronous>, transform_indices = @transform_4, window_bounds = array<i64: 1, 128>}, {transform_indices = @transform_5, window_bounds = array<i64: 8, 128>}]} {
    %c0 = arith.constant 0 : index
    %c0_0 = arith.constant 0 : index
    %0 = vector.load %arg1[%c0, %c0_0] : memref<8x32xf32, #tpu.memory_space<vmem>>, vector<8x32xf32>
    %1 = arith.truncf %0 : vector<8x32xf32> to vector<8x32xbf16>
    %c0_1 = arith.constant 0 : index
    %c0_2 = arith.constant 0 : index
    %2 = vector.load %arg2[%c0_1, %c0_2] : memref<32x896xbf16, #tpu.memory_space<vmem>>, vector<32x896xbf16>
    %cst = arith.constant dense<0.000000e+00> : vector<8x896xf32>
    %3 = tpu.matmul %1, %2, %cst {dimension_numbers = #tpu.dot_dimension_numbers<[1], [0], [0], [1], [0, 0, 1, 1], [], []>} : vector<8x32xbf16>, vector<32x896xbf16>, vector<8x896xf32> -> vector<8x896xf32>
    %c0_3 = arith.constant 0 : index
    %c0_4 = arith.constant 0 : index
    %4 = vector.load %arg3[%c0_3, %c0_4] : memref<1x896xf32, #tpu.memory_space<vmem>>, vector<1x896xf32>
    %5 = vector.broadcast %4 : vector<1x896xf32> to vector<8x896xf32>
    %6 = arith.addf %3, %5 : vector<8x896xf32>
    %cst_5 = arith.constant 0.000000e+00 : f32
    %7 = vector.broadcast %cst_5 : f32 to vector<8x896xf32>
    %8 = arith.subf %7, %6 : vector<8x896xf32>
    %9 = math.exp %8 : vector<8x896xf32>
    %cst_6 = arith.constant 1.000000e+00 : f32
    %10 = vector.broadcast %cst_6 : f32 to vector<8x896xf32>
    %11 = arith.addf %10, %9 : vector<8x896xf32>
    %12 = tpu.reciprocal %11 {approx = true} : vector<8x896xf32> -> vector<8x896xf32>
    %13 = arith.truncf %12 : vector<8x896xf32> to vector<8x896xbf16>
    %c0_7 = arith.constant 0 : index
    %c0_8 = arith.constant 0 : index
    %14 = vector.load %arg4[%c0_7, %c0_8] : memref<896x128xbf16, #tpu.memory_space<vmem>>, vector<896x128xbf16>
    %cst_9 = arith.constant dense<0.000000e+00> : vector<8x128xf32>
    %15 = tpu.matmul %13, %14, %cst_9 {dimension_numbers = #tpu.dot_dimension_numbers<[1], [0], [0], [1], [0, 0, 1, 1], [], []>} : vector<8x896xbf16>, vector<896x128xbf16>, vector<8x128xf32> -> vector<8x128xf32>
    %c0_10 = arith.constant 0 : index
    %c0_11 = arith.constant 0 : index
    %16 = vector.load %arg5[%c0_10, %c0_11] : memref<1x128xf32, #tpu.memory_space<vmem>>, vector<1x128xf32>
    %17 = vector.broadcast %16 : vector<1x128xf32> to vector<8x128xf32>
    %18 = arith.addf %15, %17 : vector<8x128xf32>
    %c0_12 = arith.constant 0 : index
    %c0_13 = arith.constant 0 : index
    %19 = vector.load %arg6[%c0_12, %c0_13] : memref<8x128xf32, #tpu.memory_space<vmem>>, vector<8x128xf32>
    tpu.vector_store %arg6[%c0_12, %c0_13], %18 {strides = array<i32>} : memref<8x128xf32, #tpu.memory_space<vmem>>, vector<8x128xf32>,
    return
  }
  func.func @transform_0(%arg0: i32) -> (i32, i32) {
    %c0_i32 = arith.constant 0 : i32
    %c0_i32_0 = arith.constant 0 : i32
    return %arg0, %c0_i32 : i32, i32
  }
  func.func @transform_1(%arg0: i32) -> (i32, i32) {
    %c0_i32 = arith.constant 0 : i32
    %c0_i32_0 = arith.constant 0 : i32
    %c0_i32_1 = arith.constant 0 : i32
    return %c0_i32, %c0_i32_0 : i32, i32
  }
  func.func @transform_2(%arg0: i32) -> (i32, i32) {
    %c0_i32 = arith.constant 0 : i32
    %c0_i32_0 = arith.constant 0 : i32
    %c0_i32_1 = arith.constant 0 : i32
    return %c0_i32, %c0_i32_0 : i32, i32
  }
  func.func @transform_3(%arg0: i32) -> (i32, i32) {
    %c0_i32 = arith.constant 0 : i32
    %c0_i32_0 = arith.constant 0 : i32
    %c0_i32_1 = arith.constant 0 : i32
    return %c0_i32, %c0_i32_0 : i32, i32
  }
  func.func @transform_4(%arg0: i32) -> (i32, i32) {
    %c0_i32 = arith.constant 0 : i32
    %c0_i32_0 = arith.constant 0 : i32
    %c0_i32_1 = arith.constant 0 : i32
    return %c0_i32, %c0_i32_0 : i32, i32
  }
  func.func @transform_5(%arg0: i32) -> (i32, i32) {
    %c0_i32 = arith.constant 0 : i32
    %c0_i32_0 = arith.constant 0 : i32
    return %arg0, %c0_i32 : i32, i32
  }
}

</mosaic_0001>

<bundles_post_ra>
// kernel: tpu_custom_call.1
= control target key start
LH: loop header
LB: loop body
LE: loop exit
PB: predicated region body
PF: predicated region fallthrough
CT: control target
= control target key end

     0   :  { %10 = vsyncpa [#allocation3], 0  ;;  %s1532_s0 = inlined_call_operand.hbm [shape: f32[8,32], index: 0, kind: input, shape index: {}]   ;;  %s1533_s1 = inlined_call_operand.hbm [shape: bf16[32,896], index: 1, kind: input, shape index: {}]   ;;  %s1534_s2 = inlined_call_operand.vmem [shape: f32[1,896], index: 2, kind: input, shape index: {}]   ;;  %s1535_s3 = inlined_call_operand.hbm [shape: bf16[896,128], index: 3, kind: input, shape index: {}]   ;;  %s1536_s4 = inlined_call_operand.vmem [shape: f32[1,128], index: 4, kind: input, shape index: {}]   ;;  %s1537_s5 = inlined_call_operand.hbm [shape: f32[8,128], index: 5, kind: output, shape index: {}]  }
   0x1   :  { %11 = vsyncpa [#allocation6], 0 }
   0x2   :  { %12 = vsyncpa [#allocation4], 0  ;;  %s1419_s18 = smov [#allocation5]   ;;  %s1325_s22 = scalar_lea.hbm %s1533_s1, 1792 }
   0x3   :  { %s28_s19 = sshll.u32 %s1419_s18, 4  ;;  %p1326_p0 = scmp.ne.s32.totalorder %s1533_s1, %s1325_s22  ;;  %s29_s19 = int_to_ptr.vmem [resolvable:$true] %s28_s19 }
   0x4   :  { %p1329_p1 = scmp.lt.u32.totalorder %s1325_s22, %s1533_s1 }
   0x6   :  { %p1331_p2 = pnand %p1329_p1, %p1326_p0 }
   0x8   :  { %1334 = shalt.err (!%p1331_p2)
}
   0x9   :  { %s1335_s27 = scalar_lea.vmem %s29_s19, 1792  ;;  %p1340_p4 = scmp.lt.s32.totalorder %s29_s19, %s29_s19 }
   0xa   :  { %p1336_p3 = scmp.ne.s32.totalorder %s29_s19, %s1335_s27  ;;  %p1341_p5 = scmp.lt.s32.totalorder %s1335_s27, %s1335_s27 }
   0xc   :  { %p1342_p6 = por %p1341_p5, %p1340_p4 }
   0xe   :  { %p1343_p7 = pnand %p1342_p6, %p1336_p3 }
  0x10   :  { %1346 = shalt.err (!%p1343_p7)
}
  0x11   :  { %s1420_s28 = smov 448   ;;  %s1421_s29 = smov 28  }
  0x12   :  { %34 = dma.hbm_to_vmem [thread:$0]  %s1533_s1, 1792, %s29_s19, [#allocation6], %s1420_s28, %s1420_s28, %s1421_s29  }
  0x13   :  { %s1422_s7 = smov [#allocation2]   ;;  %s1423_s9 = smov [#allocation7]  }
  0x14   :  { %s19_s8 = sshll.u32 %s1422_s7, 4  ;;  %s42_s10 = sshll.u32 %s1423_s9, 4  ;;  %s20_s8 = int_to_ptr.vmem [resolvable:$true] %s19_s8  ;;  %s43_s10 = int_to_ptr.vmem [resolvable:$true] %s42_s10 }
  0x15   :  { %s1347_s13 = scalar_lea.hbm %s1532_s0, 128 }
  0x16   :  { %p1348_p8 = scmp.ne.s32.totalorder %s1532_s0, %s1347_s13  ;;  %p1351_p9 = scmp.lt.u32.totalorder %s1347_s13, %s1532_s0 }
  0x18   :  { %p1353_p10 = pnand %p1351_p9, %p1348_p8 }
  0x1a   :  { %1356 = shalt.err (!%p1353_p10)
}
  0x1b   :  { %s1357_s1 = scalar_lea.vmem %s20_s8, 128  ;;  %p1362_p12 = scmp.lt.s32.totalorder %s20_s8, %s20_s8 }
  0x1c   :  { %p1358_p11 = scmp.ne.s32.totalorder %s20_s8, %s1357_s1  ;;  %p1363_p13 = scmp.lt.s32.totalorder %s1357_s1, %s1357_s1 }
  0x1e   :  { %p1364_p0 = por %p1363_p13, %p1362_p12 }
  0x20   :  { %p1365_p1 = pnand %p1364_p0, %p1358_p11 }
  0x22   :  { %1368 = shalt.err (!%p1365_p1)
}
  0x23   :  { %22 = dma.hbm_to_vmem [thread:$0]  %s1532_s0, 128, %s20_s8, [#allocation3]  }
  0x24   :  { %s1369_s22 = scalar_lea.hbm %s1535_s3, 7168 }
  0x25   :  { %p1370_p2 = scmp.ne.s32.totalorder %s1535_s3, %s1369_s22  ;;  %p1373_p3 = scmp.lt.u32.totalorder %s1369_s22, %s1535_s3 }
  0x27   :  { %p1375_p4 = pnand %p1373_p3, %p1370_p2 }
  0x29   :  { %1378 = shalt.err (!%p1375_p4)
}
  0x2a   :  { %s1379_s27 = scalar_lea.vmem %s43_s10, 7168  ;;  %p1384_p6 = scmp.lt.s32.totalorder %s43_s10, %s43_s10 }
  0x2b   :  { %p1380_p5 = scmp.ne.s32.totalorder %s43_s10, %s1379_s27  ;;  %p1385_p7 = scmp.lt.s32.totalorder %s1379_s27, %s1379_s27 }
  0x2d   :  { %p1386_p8 = por %p1385_p7, %p1384_p6 }
  0x2f   :  { %p1387_p9 = pnand %p1386_p8, %p1380_p5 }
  0x31   :  { %1390 = shalt.err (!%p1387_p9)
}
  0x32   :  { %s1424_s0 = smov 64   ;;  %s1425_s28 = smov 4  }
  0x33   :  { %48 = dma.hbm_to_vmem [thread:$0]  %s1535_s3, 7168, %s43_s10, [#allocation6], %s1424_s0, %s1424_s0, %s1425_s28  }
  0x34   :  { %1413 = dma.done.wait [#allocation3], 128  }
  0x35   :  { %1414 = vsyncadd [#allocation3], 4294967168 }
  0x36   :  { %1415 = dma.done.wait [#allocation6], 8960  }
  0x37   :  { %1416 = vsyncadd [#allocation6], 4294958336  ;;  %v1426_v0 = vmov 0   ;;  %v1221_v1 = vld [vmem:[#allocation5 + $0x4] ss:$28 sps:$4 sm:$0xff]   ;;  %v61_v9 = vld [vmem:[#allocation2] sm:$0xff]  ;;  %v81_v51 = vlaneseq }
  0x38   :  { %224 = vmatprep.mubr.bf16.mxu0 %v1426_v0  ;;  %265 = vmatprep.mubr.bf16.mxu1 %v1426_v0  ;;  %v1223_v2 = vld [vmem:[#allocation5 + $0xc] ss:$28 sps:$4 sm:$0xff]   ;;  %v1225_v3 = vld [vmem:[#allocation5] ss:$28 sps:$4 sm:$0xff]   ;;  %v1231_v7 = vld [vmem:[#allocation5 + $0x38] ss:$28 sps:$4 sm:$0xff]   ;;  %v62_v11 = vpack.c.bf16 %v61_v9, %v61_v9 }
  0x39   :  { %192 = vmatprep.subr.bf16.mxu0 %v1221_v1  ;;  %v1226_v4 = vld [vmem:[#allocation5 + $0x8] ss:$28 sps:$4 sm:$0xff]   ;;  %233 = vmatprep.subr.bf16.mxu1 %v1223_v2  ;;  %v1227_v5 = vld [vmem:[#allocation5 + $0x3c] ss:$28 sps:$4 sm:$0xff]   ;;  %v1235_v10 = vld [vmem:[#allocation5 + $0x14] ss:$28 sps:$4 sm:$0xff]  }
  0x3a   :  { %193 = vmatpush1.bf16.msra.mxu0 %v1225_v3  ;;  %234 = vmatpush1.bf16.msra.mxu1 %v1226_v4  ;;  %v1229_v6 = vld [vmem:[#allocation5 + $0x44] ss:$28 sps:$4 sm:$0xff]   ;;  %vm188_vm0 = vcmask 261120   ;;  %v1233_v12 = vld [vmem:[#allocation5 + $0x10] ss:$28 sps:$4 sm:$0xff]   ;;  %v1427_v14 = vmov 0.0  }
  0x3b   :  { %194 = vmatprep.subr.bf16.mxu0 %v1227_v5  ;;  %v1232_v8 = vld [vmem:[#allocation5 + $0x40] ss:$28 sps:$4 sm:$0xff]   ;;  %235 = vmatprep.subr.bf16.mxu1 %v1229_v6  ;;  %v1238_v13 = vld [vmem:[#allocation5 + $0x4c] ss:$28 sps:$4 sm:$0xff]   ;;  %v1239_v15 = vld [vmem:[#allocation5 + $0x18] ss:$28 sps:$4 sm:$0xff]  }
  0x3c   :  { %v1236_v16 = vld [vmem:[#allocation5 + $0x48] ss:$28 sps:$4 sm:$0xff]   ;;  %v1240_v17 = vld [vmem:[#allocation5 + $0x50] ss:$28 sps:$4 sm:$0xff]   ;;  %vm1428_vm1 = vmmov 0   ;;  %v1245_v22 = vld [vmem:[#allocation7 + $0x48] sm:$0xff]  }
  0x3d   :  { %v1241_v18 = vld [vmem:[#allocation7 + $0x40] sm:$0xff]   ;;  %v1246_v23 = vld [vmem:[#allocation7 + $0x8] sm:$0xff]   ;;  %v1249_v26 = vld [vmem:[#allocation7 + $0x50] sm:$0xff]   ;;  %v82_v52 = vshrl.u32 %v81_v51, 7  ;;  %s1429_s8 = smov [#allocation8]  }
  0x3e   :  { %195 = vmatpush1.bf16.msra.mxu0 %v1231_v7  ;;  %236 = vmatpush1.bf16.msra.mxu1 %v1232_v8  ;;  %v1242_v19 = vld [vmem:[#allocation7] sm:$0xff]   ;;  %v1247_v24 = vld [vmem:[#allocation7 + $0xc8] sm:$0xff]   ;;  %v1250_v27 = vld [vmem:[#allocation7 + $0x10] sm:$0xff]  }
  0x3f   :  { %274 = vmatprep.subr.bf16.mxu0 %v1235_v10  ;;  %1182 = vmatprep.subr.bf16.mxu1 %v1427_v14  ;;  %v1243_v20 = vld [vmem:[#allocation7 + $0xc0] sm:$0xff]   ;;  %v1248_v25 = vld [vmem:[#allocation7 + $0x88] sm:$0xff]   ;;  %v1251_v28 = vld [vmem:[#allocation7 + $0xd0] sm:$0xff]   ;;  %v83_v53 = vsub.s32 0, %v82_v52  ;;  %v91_v54 = vsub.s32 2, %v82_v52  ;;  %v87_v56 = vsub.s32 1, %v82_v52 }
  0x40   :  { %v1244_v21 = vld [vmem:[#allocation7 + $0x80] sm:$0xff]   ;;  %v1252_v29 = vld [vmem:[#allocation7 + $0x90] sm:$0xff]   ;;  %v1253_v30 = vld [vmem:[#allocation7 + $0x58] sm:$0xff]   ;;  %v95_v57 = vsub.s32 3, %v82_v52  ;;  %v103_v8 = vsub.s32 5, %v82_v52 }
  0x41   :  { %1043 = vmatmul.mubr.msk.bf16.vlgmr.msra.gmra.mrb[0].mxu0 %vm188_vm0, %v62_v11  ;;  %1044 = vmatmul.mubr.msk.bf16.vlgmr.msra.gmra.mrb[0].mxu1 %vm188_vm0, %v62_v11  ;;  %v1254_v31 = vld [vmem:[#allocation7 + $0x18] sm:$0xff]   ;;  %v1257_v34 = vld [vmem:[#allocation7 + $0x60] sm:$0xff]   ;;  %v1261_v38 = vld [vmem:[#allocation7 + $0x68] sm:$0xff]  }
  0x42   :  { %275 = vmatpush1.bf16.msra.mxu0 %v1233_v12  ;;  %306 = vmatprep.mubr.bf16.mxu0 %v1426_v0  ;;  %v1255_v32 = vld [vmem:[#allocation7 + $0xd8] sm:$0xff]   ;;  %v1258_v35 = vld [vmem:[#allocation7 + $0x20] sm:$0xff]   ;;  %v1262_v39 = vld [vmem:[#allocation7 + $0x28] sm:$0xff]  }
  0x43   :  { %276 = vmatprep.subr.bf16.mxu0 %v1238_v13  ;;  %1183 = vmatpush3.bf16.msra.mxu1 %v1239_v15  ;;  %v1256_v33 = vld [vmem:[#allocation7 + $0x98] sm:$0xff]   ;;  %v1259_v36 = vld [vmem:[#allocation7 + $0xe0] sm:$0xff]   ;;  %v1263_v40 = vld [vmem:[#allocation7 + $0xe8] sm:$0xff]  }
  0x44   :  { %1184 = vmatprep.subr.bf16.mxu1 %v1427_v14  ;;  %1186 = vmatprep.mubr.msk.bf16.mxu1 %vm1428_vm1, %v1427_v14  ;;  %v1260_v37 = vld [vmem:[#allocation7 + $0xa0] sm:$0xff]   ;;  %v1264_v41 = vld [vmem:[#allocation7 + $0xa8] sm:$0xff]   ;;  %v1265_v42 = vld [vmem:[#allocation7 + $0x70] sm:$0xff]  }
  0x45   :  { %v1267_v43 = vld [vmem:[#allocation7 + $0xf0] sm:$0xff]   ;;  %v1269_v46 = vld [vmem:[#allocation7 + $0x78] sm:$0xff]   ;;  %v1273_v50 = vld [vmem:[#allocation7 + $0x140] sm:$0xff]  }
  0x46   :  { %277 = vmatpush1.bf16.msra.mxu0 %v1236_v16  ;;  %v1266_v44 = vld [vmem:[#allocation7 + $0x30] sm:$0xff]   ;;  %v1270_v47 = vld [vmem:[#allocation7 + $0x38] sm:$0xff]   ;;  %v79_v55 = vld [vmem:[%s1534_s2] sm:$0xff] }
  0x47   :  { %1185 = vmatpush3.bf16.msra.mxu1 %v1240_v17  ;;  %1107 = vmatprep.subr.bf16.mxu0 %v1241_v18  ;;  %v1268_v45 = vld [vmem:[#allocation7 + $0xb0] sm:$0xff]   ;;  %v1271_v48 = vld [vmem:[#allocation7 + $0xf8] sm:$0xff]   ;;  %v84_v58 = vrot.slane %v79_v55, %v83_v53  ;;  %v92_v59 = vrot.slane %v79_v55, %v91_v54  ;;  %v88_v60 = vrot.slane %v79_v55, %v87_v56 }
  0x48   :  { %1129 = vmatprep.subr.bf16.mxu1 %v1243_v20  ;;  %v1272_v49 = vld [vmem:[#allocation7 + $0xb8] sm:$0xff]   ;;  %v96_v61 = vrot.slane %v79_v55, %v95_v57  ;;  %v104_v20 = vrot.slane %v79_v55, %v103_v8 }
  0x49   :  { %1045 = vmatmul.mubr.msk.bf16.vlgmr.msra.gmra.mrb[4].mxu0 %vm188_vm0, %v62_v11  ;;  %v1283_v8 = vld [vmem:[#allocation7 + $0x118] sm:$0xff]  }
  0x4a   :  { %1187 = vmatmul.mubr.msk.bf16.vlgmr.msra.gmra.mrb[4].mxu1 %vm188_vm0, %v62_v11  ;;  %1108 = vmatpush3.bf16.msra.mxu0 %v1242_v19 }
  0x4b   :  { %1130 = vmatpush3.bf16.msra.mxu1 %v1244_v21  ;;  %1109 = vmatprep.subr.bf16.mxu0 %v1245_v22 }
  0x4c   :  { %1131 = vmatprep.subr.bf16.mxu1 %v1247_v24 }
  0x4e   :  { %1110 = vmatpush3.bf16.msra.mxu0 %v1246_v23 }
  0x4f   :  { %1132 = vmatpush3.bf16.msra.mxu1 %v1248_v25  ;;  %1111 = vmatprep.subr.bf16.mxu0 %v1249_v26 }
  0x50   :  { %1133 = vmatprep.subr.bf16.mxu1 %v1251_v28 }
  0x52   :  { %1112 = vmatpush3.bf16.msra.mxu0 %v1250_v27 }
  0x53   :  { %1134 = vmatpush3.bf16.msra.mxu1 %v1252_v29  ;;  %1113 = vmatprep.subr.bf16.mxu0 %v1253_v30 }
  0x54   :  { %1135 = vmatprep.subr.bf16.mxu1 %v1255_v32  ;;  %v107_v32 = vsub.s32 6, %v82_v52 }
  0x56   :  { %1114 = vmatpush3.bf16.msra.mxu0 %v1254_v31 }
  0x57   :  { %1136 = vmatpush3.bf16.msra.mxu1 %v1256_v33  ;;  %1115 = vmatprep.subr.bf16.mxu0 %v1257_v34  ;;  %v99_v33 = vsub.s32 4, %v82_v52 }
  0x58   :  { %1137 = vmatprep.subr.bf16.mxu1 %v1259_v36 }
  0x5a   :  { %1116 = vmatpush3.bf16.msra.mxu0 %v1258_v35 }
  0x5b   :  { %1138 = vmatpush3.bf16.msra.mxu1 %v1260_v37  ;;  %1117 = vmatprep.subr.bf16.mxu0 %v1261_v38 }
  0x5c   :  { %1139 = vmatprep.subr.bf16.mxu1 %v1263_v40 }
  0x5e   :  { %1118 = vmatpush3.bf16.msra.mxu0 %v1262_v39  ;;  %v108_v39 = vrot.slane %v79_v55, %v107_v32  ;;  %v1047_v32 = vld [vmem:[%s1536_s4] ss:$0 sm:$0xff]  ;;  %s1019_s4 = sshll.u32 %s1429_s8, 4  ;;  %s1020_s4 = int_to_ptr.vmem [resolvable:$true] %s1019_s4 }
  0x5f   :  { %1140 = vmatpush3.bf16.msra.mxu1 %v1264_v41  ;;  %1119 = vmatprep.subr.bf16.mxu0 %v1265_v42  ;;  %v100_v42 = vrot.slane %v79_v55, %v99_v33  ;;  %v1274_v55 = vld [vmem:[#allocation7 + $0x100] sm:$0xff]   ;;  %s1391_s9 = scalar_lea.vmem %s1020_s4, 128  ;;  %p1396_p11 = scmp.lt.s32.totalorder %s1020_s4, %s1020_s4 }
  0x60   :  { %1141 = vmatprep.subr.bf16.mxu1 %v1267_v43  ;;  %p1392_p10 = scmp.ne.s32.totalorder %s1020_s4, %s1391_s9  ;;  %p1397_p12 = scmp.lt.s32.totalorder %s1391_s9, %s1391_s9 }
  0x62   :  { %1120 = vmatpush3.bf16.msra.mxu0 %v1266_v44  ;;  %p1398_p13 = por %p1397_p12, %p1396_p11 }
  0x63   :  { %1142 = vmatpush3.bf16.msra.mxu1 %v1268_v45  ;;  %1121 = vmatprep.subr.bf16.mxu0 %v1269_v46 }
  0x64   :  { %1143 = vmatprep.subr.bf16.mxu1 %v1271_v48  ;;  %p1399_p0 = pnand %p1398_p13, %p1392_p10 }
  0x66   :  { %1122 = vmatpush3.bf16.msra.mxu0 %v1270_v47 }
  0x67   :  { %1144 = vmatpush3.bf16.msra.mxu1 %v1272_v49  ;;  %1151 = vmatprep.subr.bf16.mxu0 %v1273_v50 }
  0x68   :  { %1190 = vmatprep.subr.bf16.mxu1 %v1427_v14 }
 0x114   :  { %v226_v62 = vpop.f32.mrb[0].mxu0  ;;  %v267_v63 = vpop.f32.mrb[0].mxu1 }
 0x115   :  { %v227_v0 = vadd.f32 %v226_v62, %v84_v58  ;;  %v268_v1 = vadd.f32 %v267_v63, %v92_v59  ;;  %v228_v2 = vpop.f32.mrb[1].mxu0  ;;  %v269_v3 = vpop.f32.mrb[1].mxu1  ;;  %v1276_v62 = vld [vmem:[#allocation7 + $0x148] sm:$0xff]  }
 0x116   :  { %v229_v4 = vadd.f32 %v228_v2, %v88_v60  ;;  %v270_v5 = vadd.f32 %v269_v3, %v96_v61  ;;  %v230_v6 = vpop.f32.mrb[2].mxu0  ;;  %v271_v7 = vpop.f32.mrb[2].mxu1  ;;  %v1275_v61 = vld [vmem:[#allocation7 + $0x180] sm:$0xff]   ;;  %v1277_v63 = vld [vmem:[#allocation7 + $0x108] sm:$0xff]  }
 0x117   :  { %v355_v9 = vsub.f32 0.0, %v227_v0  ;;  %v357_v10 = vsub.f32 0.0, %v268_v1  ;;  %v231_v11 = vpop.f32.mrb[3].mxu0  ;;  %v272_v12 = vpop.f32.mrb[3].mxu1  ;;  %v1278_v0 = vld [vmem:[#allocation7 + $0x188] sm:$0xff]   ;;  %v1279_v1 = vld [vmem:[#allocation7 + $0x150] sm:$0xff]  }
 0x118   :  { %v356_v13 = vsub.f32 0.0, %v229_v4  ;;  %v358_v15 = vsub.f32 0.0, %v270_v5  ;;  %v1280_v4 = vld [vmem:[#allocation7 + $0x110] sm:$0xff]   ;;  %v1282_v6 = vld [vmem:[#allocation7 + $0x158] sm:$0xff]   ;;  %v1285_v11 = vld [vmem:[#allocation7 + $0x160] sm:$0xff]  }
 0x119   :  { %v362_v16 = vmul.f32 1.442695, %v355_v9  ;;  %v366_v17 = vmul.f32 1.442695, %v357_v10  ;;  %v1281_v5 = vld [vmem:[#allocation7 + $0x190] sm:$0xff]   ;;  %v1284_v10 = vld [vmem:[#allocation7 + $0x198] sm:$0xff]  }
 0x11a   :  { %v364_v18 = vmul.f32 1.442695, %v356_v13  ;;  %v368_v19 = vmul.f32 1.442695, %v358_v15  ;;  %v1286_v15 = vld [vmem:[#allocation7 + $0x120] sm:$0xff]  }
 0x11b   :  { %1297 = vpow2.f32 %v362_v16  ;;  %v1287_v16 = vld [vmem:[#allocation7 + $0x1a0] sm:$0xff]  }
 0x11c   :  { %1299 = vpow2.f32 %v366_v17  ;;  %v308_v21 = vpop.f32.mrb[4].mxu0  ;;  %v1288_v17 = vld [vmem:[#allocation7 + $0x168] sm:$0xff]  }
 0x11d   :  { %1301 = vpow2.f32 %v364_v18  ;;  %v310_v22 = vpop.f32.mrb[5].mxu0  ;;  %v349_v23 = vpop.f32.mrb[4].mxu1  ;;  %v309_v45 = vadd.f32 %v308_v21, %v100_v42  ;;  %v1289_v18 = vld [vmem:[#allocation7 + $0x128] sm:$0xff]   ;;  %v1292_v21 = vld [vmem:[#allocation7 + $0x130] sm:$0xff]  }
 0x11e   :  { %1303 = vpow2.f32 %v368_v19  ;;  %v311_v24 = vadd.f32 %v310_v22, %v104_v20  ;;  %v312_v25 = vpop.f32.mrb[6].mxu0  ;;  %v1188_v26 = vpop.f32.mrb[5].mxu1  ;;  %v350_v44 = vadd.f32 %v349_v23, %v108_v39  ;;  %v1290_v19 = vld [vmem:[#allocation7 + $0x1a8] sm:$0xff]   ;;  %v1291_v20 = vld [vmem:[#allocation7 + $0x170] sm:$0xff]   ;;  %v1294_v23 = vld [vmem:[#allocation7 + $0x178] sm:$0xff]  }
 0x11f   :  { %v313_v27 = vpop.f32.mrb[7].mxu0  ;;  %v352_v28 = vpop.f32.mrb[6].mxu1  ;;  %v359_v49 = vsub.f32 0.0, %v309_v45  ;;  %v1293_v22 = vld [vmem:[#allocation7 + $0x1b0] sm:$0xff]   ;;  %v1296_v26 = vld [vmem:[#allocation7 + $0x1b8] sm:$0xff]  }
 0x120   :  { %v360_v29 = vsub.f32 0.0, %v311_v24  ;;  %v1189_v30 = vpop.f32.mrb[7].mxu1  ;;  %v361_v48 = vsub.f32 0.0, %v350_v44  ;;  %v1295_v24 = vld [vmem:[#allocation7 + $0x138] sm:$0xff]  }
 0x121   :  { %v370_v54 = vmul.f32 1.442695, %v359_v49 }
 0x122   :  { %v372_v31 = vmul.f32 1.442695, %v360_v29  ;;  %v374_v52 = vmul.f32 1.442695, %v361_v48 }
 0x124   :  { %1305 = vpow2.f32 %v372_v31 }
 0x125   :  { %v1298_v34 = vpop.eup %1297 }
 0x126   :  { %v1300_v35 = vpop.eup %1299  ;;  %v376_v36 = vadd.f32 1.0, %v1298_v34 }
 0x127   :  { %v1302_v37 = vpop.eup %1301  ;;  %v378_v38 = vadd.f32 1.0, %v1300_v35 }
 0x128   :  { %v1304_v40 = vpop.eup %1303  ;;  %1307 = vrcp.f32 %v376_v36  ;;  %v377_v41 = vadd.f32 1.0, %v1302_v37 }
 0x129   :  { %1309 = vrcp.f32 %v378_v38  ;;  %v379_v43 = vadd.f32 1.0, %v1304_v40 }
 0x12a   :  { %1311 = vrcp.f32 %v377_v41 }
 0x12b   :  { %1313 = vrcp.f32 %v379_v43 }
 0x12e   :  { %v1306_v46 = vpop.eup %1305 }
 0x12f   :  { %v381_v47 = vadd.f32 1.0, %v1306_v46 }
 0x131   :  { %1315 = vrcp.f32 %v381_v47 }
 0x132   :  { %v1308_v50 = vpop.eup %1307  ;;  %1317 = vpow2.f32 %v374_v52 }
 0x133   :  { %v1310_v51 = vpop.eup %1309  ;;  %v390_v60 = vpack.c.bf16 %v1308_v50, %v1308_v50  ;;  %1319 = vpow2.f32 %v370_v54 }
 0x134   :  { %v1312_v53 = vpop.eup %1311  ;;  %v392_v58 = vpack.c.bf16 %v1310_v51, %v1310_v51 }
 0x135   :  { %v1314_v56 = vpop.eup %1313  ;;  %v391_v57 = vpack.c.bf16 %v1312_v53, %v1312_v53 }
 0x136   :  { %v393_v59 = vpack.c.bf16 %v1314_v56, %v1314_v56 }
 0x137   :  { %884 = vmatprep.mubr.bf16.mxu0 %v391_v57 }
 0x138   :  { %924 = vmatprep.mubr.bf16.mxu1 %v393_v59  ;;  %885 = vmatmul.mubr.bf16.vlgmr.msra.gmra.mrb[8].mxu0 %v390_v60 }
 0x139   :  { %925 = vmatmul.mubr.bf16.vlgmr.msra.gmra.mrb[8].mxu1 %v392_v58  ;;  %1152 = vmatpush3.bf16.msra.mxu0 %v1274_v55 }
 0x13a   :  { %1191 = vmatpush3.bf16.msra.mxu1 %v1275_v61  ;;  %1153 = vmatprep.subr.bf16.mxu0 %v1276_v62 }
 0x13b   :  { %v1316_v2 = vpop.eup %1315  ;;  %1192 = vmatprep.subr.bf16.mxu1 %v1427_v14  ;;  %1206 = vmatprep.mubr.msk.bf16.mxu1 %vm1428_vm1, %v1427_v14 }
 0x13c   :  { %v395_v3 = vpack.c.bf16 %v1316_v2, %v1316_v2  ;;  %v1318_v7 = vpop.eup %1317 }
 0x13d   :  { %1154 = vmatpush3.bf16.msra.mxu0 %v1277_v63  ;;  %v1320_v9 = vpop.eup %1319  ;;  %v382_v12 = vadd.f32 1.0, %v1318_v7 }
 0x13e   :  { %1193 = vmatpush3.bf16.msra.mxu1 %v1278_v0  ;;  %1155 = vmatprep.subr.bf16.mxu0 %v1279_v1  ;;  %v380_v13 = vadd.f32 1.0, %v1320_v9 }
 0x13f   :  { %1194 = vmatprep.subr.bf16.mxu1 %v1427_v14  ;;  %964 = vmatprep.mubr.bf16.mxu0 %v395_v3  ;;  %1321 = vrcp.f32 %v382_v12 }
 0x140   :  { %1323 = vrcp.f32 %v380_v13 }
 0x141   :  { %1156 = vmatpush3.bf16.msra.mxu0 %v1280_v4 }
 0x142   :  { %1195 = vmatpush3.bf16.msra.mxu1 %v1281_v5  ;;  %1157 = vmatprep.subr.bf16.mxu0 %v1282_v6 }
 0x143   :  { %1196 = vmatprep.subr.bf16.mxu1 %v1427_v14 }
 0x145   :  { %1158 = vmatpush3.bf16.msra.mxu0 %v1283_v8 }
 0x146   :  { %1197 = vmatpush3.bf16.msra.mxu1 %v1284_v10  ;;  %1159 = vmatprep.subr.bf16.mxu0 %v1285_v11 }
 0x147   :  { %1198 = vmatprep.subr.bf16.mxu1 %v1427_v14 }
 0x149   :  { %1160 = vmatpush3.bf16.msra.mxu0 %v1286_v15  ;;  %v1322_v25 = vpop.eup %1321 }
 0x14a   :  { %1199 = vmatpush3.bf16.msra.mxu1 %v1287_v16  ;;  %1161 = vmatprep.subr.bf16.mxu0 %v1288_v17  ;;  %v1324_v27 = vpop.eup %1323  ;;  %v396_v28 = vpack.c.bf16 %v1322_v25, %v1322_v25 }
 0x14b   :  { %1200 = vmatprep.subr.bf16.mxu1 %v1427_v14  ;;  %v394_v29 = vpack.c.bf16 %v1324_v27, %v1324_v27 }
 0x14d   :  { %1162 = vmatpush3.bf16.msra.mxu0 %v1289_v18 }
 0x14e   :  { %1201 = vmatpush3.bf16.msra.mxu1 %v1290_v19  ;;  %1163 = vmatprep.subr.bf16.mxu0 %v1291_v20 }
 0x14f   :  { %1202 = vmatprep.subr.bf16.mxu1 %v1427_v14 }
 0x151   :  { %1164 = vmatpush3.bf16.msra.mxu0 %v1292_v21 }
 0x152   :  { %1203 = vmatpush3.bf16.msra.mxu1 %v1293_v22  ;;  %1165 = vmatprep.subr.bf16.mxu0 %v1294_v23 }
 0x153   :  { %1204 = vmatprep.subr.bf16.mxu1 %v1427_v14 }
 0x155   :  { %1166 = vmatpush3.bf16.msra.mxu0 %v1295_v24 }
 0x156   :  { %1205 = vmatpush3.bf16.msra.mxu1 %v1296_v26 }
 0x158   :  { %965 = vmatmul.mubr.bf16.vlgmr.msra.gmra.mrb[12].mxu0 %v394_v29 }
 0x159   :  { %1207 = vmatmul.mubr.bf16.vlgmr.msra.gmra.mrb[12].mxu1 %v396_v28 }
 0x20b   :  { %v1123_v30 = vpop.f32.mrb[8].mxu0 }
 0x20c   :  { %v1145_v31 = vpop.f32.mrb[8].mxu1  ;;  %v1124_v33 = vpop.f32.mrb[9].mxu0 }
 0x20d   :  { %v1125_v34 = vadd.f32 %v1124_v33, %v1123_v30  ;;  %v1146_v35 = vpop.f32.mrb[9].mxu1  ;;  %v1126_v36 = vpop.f32.mrb[10].mxu0 }
 0x20e   :  { %v1147_v37 = vadd.f32 %v1146_v35, %v1145_v31  ;;  %v1148_v38 = vpop.f32.mrb[10].mxu1  ;;  %v1127_v39 = vpop.f32.mrb[11].mxu0 }
 0x20f   :  { %v887_v14 = vadd.f32 %v1125_v34, %v1047_v32  ;;  %v1149_v40 = vpop.f32.mrb[11].mxu1 }
 0x211   :  { %v927_v41 = vadd.f32 %v1147_v37, %v887_v14 }
 0x22b   :  { %v1167_v42 = vpop.f32.mrb[12].mxu0 }
 0x22c   :  { %v1168_v43 = vpop.f32.mrb[13].mxu0  ;;  %v1006_v44 = vpop.f32.mrb[12].mxu1 }
 0x22d   :  { %v1169_v45 = vadd.f32 %v1168_v43, %v1167_v42  ;;  %v1170_v46 = vpop.f32.mrb[14].mxu0  ;;  %v1208_v47 = vpop.f32.mrb[13].mxu1 }
 0x22e   :  { %v1171_v48 = vpop.f32.mrb[15].mxu0  ;;  %v1009_v49 = vpop.f32.mrb[14].mxu1 }
 0x22f   :  { %v967_v50 = vadd.f32 %v1169_v45, %v927_v41  ;;  %v1209_v51 = vpop.f32.mrb[15].mxu1 }
 0x231   :  { %v1007_v52 = vadd.f32 %v1006_v44, %v967_v50 }
 0x233   :  { %1012 = vst [vmem:[#allocation8] sm:$0xff] %v1007_v52 }
 0x234   :  { %1402 = shalt.err (!%p1399_p0)
}
 0x235   :  { %s1403_s12 = scalar_lea.hbm %s1537_s5, 128 }
 0x236   :  { %p1404_p1 = scmp.ne.s32.totalorder %s1537_s5, %s1403_s12  ;;  %p1407_p2 = scmp.lt.u32.totalorder %s1403_s12, %s1537_s5 }
 0x238   :  { %p1409_p3 = pnand %p1407_p2, %p1404_p1 }
 0x23a   :  { %1412 = shalt.err (!%p1409_p3)
}
 0x23b   :  { %1022 = dma.vmem_to_hbm [thread:$0]  %s1020_s4, 128, %s1537_s5, [#allocation4]  }
 0x23c   :  { %1417 = dma.done.wait [#allocation4], 128  }
 0x23d   :  { %1418 = vsyncadd [#allocation4], 4294967168 }
 0x23e   :  { %1026 = vsyncpa [#allocation3], 1 }
 0x23f   :  { %1027 = vsyncpa [#allocation6], 1 }
 0x240   :  { %1028 = vsyncpa [#allocation4], 1 }

</bundles_post_ra>
